<compile_context>
chip_gen: v5e
topology: v5e:2x2
jax: 0.10.0
libtpu: 0.0.40
codegen_flags: <defaults>
</compile_context>

<pallas_src>
import functools

import jax
import jax.numpy as jnp
from jax.experimental import pallas as pl
from jax.experimental.pallas import tpu as pltpu


def limit_mlp_kernel(x_ref, w0_ref, b01_ref, w1_ref, w2_ref, blim_ref, o_ref,
                     *, mm_dtype):
    # Batch lives on the lane (last) axis for every matmul (transposed network):
    #     yT = clamp(W2 @ relu(W1 @ relu(W0 @ xT + b0) + b1) + b2, lo, hi)
    # mm_dtype (bf16 default) MXU operands, f32 accumulation and elementwise math.
    xT = x_ref[...].T.astype(mm_dtype)                       # [in_sz, bm]   (XLU)
    h0 = jnp.dot(w0_ref[...].astype(mm_dtype), xT,
                 preferred_element_type=jnp.float32)         # [hid, bm]
    h0 = jnp.maximum(h0 + b01_ref[:, 0:1], 0.0)              # + b0, ReLU
    h1 = jnp.dot(w1_ref[...].astype(mm_dtype), h0.astype(mm_dtype),
                 preferred_element_type=jnp.float32)         # [hid, bm]
    h1 = jnp.maximum(h1 + b01_ref[:, 1:2], 0.0)              # + b1, ReLU
    y = jnp.dot(w2_ref[...].astype(mm_dtype), h1.astype(mm_dtype),
                preferred_element_type=jnp.float32)          # [out_sz, bm]
    y = y + blim_ref[:, 0:1]                                 # + b2
    y = jnp.minimum(jnp.maximum(y, blim_ref[:, 1:2]),        # clamp(lower, upper)
                    blim_ref[:, 2:3])
    o_ref[...] = y.T.astype(o_ref.dtype)                     # [bm, out_sz]  (XLU)


def _choose_block_m(B, hid):
    """Batch tile (lane width of the transposed compute).

    * B < 256: one tile (grid=(1,)) — amortizes ~0.35us/step pipeline overhead.
    * B >= 256: cap tied to hidden_size so ~2*hid*block_m*4 B of live f32
      activations stays within a few hundred KiB (hid=32 -> 512 lanes,
      hid>=256 -> 128), and block_m <= ~B/2 so the grid has >= 2 "parallel"
      steps for v7x's two TensorCores.  A non-divisible tail becomes a masked
      partial last block (batch rows are independent, so this is safe).
      On single-TC chips with tiny hid the cap could be raised further; the
      gain is only a few percent at very large B.
    """
    if B < 256:
        return B
    cap = int(max(128, min(2048, pl.next_power_of_2(max(1, (512 * 32) // hid)))))
    half = max(128, ((B // 2) // 128) * 128)
    return min(cap, half)


def limit_mlp(x, params, lower_limit, upper_limit, *, matmul_dtype=jnp.bfloat16):
    """x: [B, input_size] f32 -> [B, output_size] f32.

    params: PyTorch-layout (w [out_features, in_features], b [out_features]) for
    l0, linear1, linear2 (layer_num=2).  matmul_dtype=jnp.float32 reproduces the
    f32 module semantics; the bf16 default trades ~1e-2-level error for MXU rate
    and halved matmul-operand bytes.
    """
    w0, b0, w1, b1, w2, b2 = params
    B, in_sz = x.shape
    hid = w0.shape[0]
    out_sz = w2.shape[0]

    block_m = _choose_block_m(B, hid)
    grid = (pl.cdiv(B, block_m),)

    f32 = jnp.float32
    # Pack tiny per-feature vectors -> fewer DMA descriptors / buffer pairs.
    b01 = jnp.stack([b0.astype(f32), b1.astype(f32)], axis=1)            # [hid, 2]
    lo = jnp.broadcast_to(jnp.asarray(lower_limit, f32).reshape(-1), (out_sz,))
    hi = jnp.broadcast_to(jnp.asarray(upper_limit, f32).reshape(-1), (out_sz,))
    blim = jnp.stack([b2.astype(f32), lo, hi], axis=1)                   # [out_sz, 3]

    # Replicated (constant-index) operands never change across grid steps:
    # single-buffer them once they are large enough that default double
    # buffering eats VMEM headroom (v7x 64 MiB phys / v5e 16 MiB scoped).
    rep_bytes = 4 * (w0.size + w1.size + w2.size)
    single_buffer = rep_bytes >= (1 << 20)

    def rep_spec(shape):
        if single_buffer:
            return pl.BlockSpec(shape, lambda i: (0, 0),
                                pipeline_mode=pl.Buffered(1))
        return pl.BlockSpec(shape, lambda i: (0, 0))

    kernel = functools.partial(limit_mlp_kernel, mm_dtype=matmul_dtype)

    out = pl.pallas_call(
        kernel,
        out_shape=jax.ShapeDtypeStruct((B, out_sz), jnp.float32),
        grid_spec=pltpu.PrefetchScalarGridSpec(
            num_scalar_prefetch=0,
            grid=grid,
            in_specs=[
                pl.BlockSpec((block_m, in_sz), lambda i: (i, 0)),  # x rows (f32)
                rep_spec((hid, in_sz)),                            # w0
                rep_spec((hid, 2)),                                # [b0 | b1]
                rep_spec((hid, hid)),                              # w1
                rep_spec((out_sz, hid)),                           # w2
                rep_spec((out_sz, 3)),                             # [b2 | lo | hi]
            ],
            out_specs=pl.BlockSpec((block_m, out_sz), lambda i: (i, 0)),
        ),
        compiler_params=pltpu.CompilerParams(
            dimension_semantics=("parallel",)),
    )(x.astype(f32), w0, b01, w1, w2, blim)
    return out


def init_params(key, input_size, hidden_size, output_size):
    """Deterministic init mimicking nn.Linear (uniform +-1/sqrt(fan_in)).
    Weights stored PyTorch-style as [out_features, in_features]."""
    ks = jax.random.split(key, 6)

    def lin(kw, kb, fan_in, fan_out):
        bound = 1.0 / jnp.sqrt(fan_in)
        w = jax.random.uniform(kw, (fan_out, fan_in), jnp.float32, -bound, bound)
        b = jax.random.uniform(kb, (fan_out,), jnp.float32, -bound, bound)
        return w, b

    w0, b0 = lin(ks[0], ks[1], input_size, hidden_size)
    w1, b1 = lin(ks[2], ks[3], hidden_size, hidden_size)
    w2, b2 = lin(ks[4], ks[5], hidden_size, output_size)
    return (w0, b0, w1, b1, w2, b2)


def reference_f32(x, params, lo, hi):
    """Full-precision reference (matches the PyTorch module in f32)."""
    w0, b0, w1, b1, w2, b2 = params
    h = jnp.maximum(x @ w0.T + b0, 0.0)
    h = jnp.maximum(h @ w1.T + b1, 0.0)
    y = h @ w2.T + b2
    return jnp.clip(y, lo.reshape(1, -1), hi.reshape(1, -1))


def reference_matched(x, params, lo, hi, dtype=jnp.bfloat16):
    """Reference with the same precision recipe as the bf16 kernel path
    (bf16 matmul operands, f32 accumulation / elementwise)."""
    w0, b0, w1, b1, w2, b2 = params
    h = jnp.dot(x.astype(dtype), w0.T.astype(dtype),
                preferred_element_type=jnp.float32) + b0
    h = jnp.maximum(h, 0.0)
    h = jnp.dot(h.astype(dtype), w1.T.astype(dtype),
                preferred_element_type=jnp.float32) + b1
    h = jnp.maximum(h, 0.0)
    y = jnp.dot(h.astype(dtype), w2.T.astype(dtype),
                preferred_element_type=jnp.float32) + b2
    return jnp.clip(y, lo.reshape(1, -1), hi.reshape(1, -1))


if __name__ == "__main__":
    key = jax.random.PRNGKey(0)
    k_x, k_p = jax.random.split(key)

    batch, input_size, hidden_size, output_size = 16, 16, 32, 4

    x = jax.random.normal(k_x, (batch, input_size), jnp.float32)
    params = init_params(k_p, input_size, hidden_size, output_size)

    # non-trainable limit parameters (as in LimitMLP.__init__)
    lower_limit = jnp.full((output_size,), -0.5, jnp.float32)
    upper_limit = jnp.full((output_size,), 0.5, jnp.float32)

    fwd = jax.jit(limit_mlp)
    out = jax.block_until_ready(fwd(x, params, lower_limit, upper_limit))
    assert out.shape == (batch, output_size)

    # Tight check vs a precision-matched (bf16-operand) reference.
    ref_m = reference_matched(x, params, lower_limit, upper_limit)
    assert jnp.allclose(out, ref_m, atol=1e-3, rtol=1e-3), "mismatch vs matched ref"

    # Loose check vs the full-f32 module semantics (bf16 operand rounding).
    ref_f = reference_f32(x, params, lower_limit, upper_limit)
    assert jnp.allclose(out, ref_f, atol=5e-2, rtol=5e-2), "mismatch vs f32 ref"

    # f32-operand path for callers that need the unquantized module behaviour.
    fwd_f32 = jax.jit(functools.partial(limit_mlp, matmul_dtype=jnp.float32))
    out_f32 = jax.block_until_ready(fwd_f32(x, params, lower_limit, upper_limit))
    assert out_f32.shape == (batch, output_size)
    assert jnp.allclose(out_f32, ref_f, atol=2e-2, rtol=2e-2), "mismatch (f32 path)"

    print("KERNEL_OK")
</pallas_src>

<mosaic_0001>
module attributes {stable_mosaic.version = 11 : i64} {
  func.func @limit_mlp_kernel(%arg0: i32, %arg1: memref<16x16xf32, #tpu.memory_space<vmem>>, %arg2: memref<32x16xf32, #tpu.memory_space<vmem>>, %arg3: memref<32x2xf32, #tpu.memory_space<vmem>>, %arg4: memref<32x32xf32, #tpu.memory_space<vmem>>, %arg5: memref<4x32xf32, #tpu.memory_space<vmem>>, %arg6: memref<4x3xf32, #tpu.memory_space<vmem>>, %arg7: memref<16x4xf32, #tpu.memory_space<vmem>>) attributes {dimension_semantics = [#tpu.dimension_semantics<parallel>], iteration_bounds = array<i64: 1>, scalar_prefetch = 0 : i64, scratch_operands = 0 : i64, tpu.core_type = #tpu.core_type<tc>, window_params = [{transform_indices = @transform_0, window_bounds = array<i64: 16, 16>}, {pipeline_mode = #tpu.pipeline_mode<synchronous>, transform_indices = @transform_1, window_bounds = array<i64: 32, 16>}, {pipeline_mode = #tpu.pipeline_mode<synchronous>, transform_indices = @transform_2, window_bounds = array<i64: 32, 2>}, {pipeline_mode = #tpu.pipeline_mode<synchronous>, transform_indices = @transform_3, window_bounds = array<i64: 32, 32>}, {pipeline_mode = #tpu.pipeline_mode<synchronous>, transform_indices = @transform_4, window_bounds = array<i64: 4, 32>}, {pipeline_mode = #tpu.pipeline_mode<synchronous>, transform_indices = @transform_5, window_bounds = array<i64: 4, 3>}, {transform_indices = @transform_6, window_bounds = array<i64: 16, 4>}]} {
    %c0 = arith.constant 0 : index
    %c0_0 = arith.constant 0 : index
    %0 = vector.load %arg1[%c0, %c0_0] : memref<16x16xf32, #tpu.memory_space<vmem>>, vector<16x16xf32>
    %1 = tpu.transpose %0, [1, 0] : vector<16x16xf32> -> vector<16x16xf32>
    %2 = arith.truncf %1 : vector<16x16xf32> to vector<16x16xbf16>
    %c0_1 = arith.constant 0 : index
    %c0_2 = arith.constant 0 : index
    %3 = vector.load %arg2[%c0_1, %c0_2] : memref<32x16xf32, #tpu.memory_space<vmem>>, vector<32x16xf32>
    %4 = arith.truncf %3 : vector<32x16xf32> to vector<32x16xbf16>
    %cst = arith.constant dense<0.000000e+00> : vector<32x16xf32>
    %5 = tpu.matmul %4, %2, %cst {dimension_numbers = #tpu.dot_dimension_numbers<[1], [0], [0], [1], [0, 0, 1, 1], [], []>} : vector<32x16xbf16>, vector<16x16xbf16>, vector<32x16xf32> -> vector<32x16xf32>
    %c0_3 = arith.constant 0 : index
    %c0_4 = arith.constant 0 : index
    %6 = vector.load %arg3[%c0_3, %c0_4] : memref<32x2xf32, #tpu.memory_space<vmem>>, vector<32x1xf32>
    %7 = vector.broadcast %6 : vector<32x1xf32> to vector<32x16xf32>
    %8 = arith.addf %5, %7 : vector<32x16xf32>
    %cst_5 = arith.constant 0.000000e+00 : f32
    %9 = vector.broadcast %cst_5 : f32 to vector<32x16xf32>
    %10 = arith.maximumf %8, %9 : vector<32x16xf32>
    %c0_6 = arith.constant 0 : index
    %c0_7 = arith.constant 0 : index
    %11 = vector.load %arg4[%c0_6, %c0_7] : memref<32x32xf32, #tpu.memory_space<vmem>>, vector<32x32xf32>
    %12 = arith.truncf %11 : vector<32x32xf32> to vector<32x32xbf16>
    %13 = arith.truncf %10 : vector<32x16xf32> to vector<32x16xbf16>
    %cst_8 = arith.constant dense<0.000000e+00> : vector<32x16xf32>
    %14 = tpu.matmul %12, %13, %cst_8 {dimension_numbers = #tpu.dot_dimension_numbers<[1], [0], [0], [1], [0, 0, 1, 1], [], []>} : vector<32x32xbf16>, vector<32x16xbf16>, vector<32x16xf32> -> vector<32x16xf32>
    %c0_9 = arith.constant 0 : index
    %c1 = arith.constant 1 : index
    %15 = vector.load %arg3[%c0_9, %c1] : memref<32x2xf32, #tpu.memory_space<vmem>>, vector<32x1xf32>
    %16 = vector.broadcast %15 : vector<32x1xf32> to vector<32x16xf32>
    %17 = arith.addf %14, %16 : vector<32x16xf32>
    %cst_10 = arith.constant 0.000000e+00 : f32
    %18 = vector.broadcast %cst_10 : f32 to vector<32x16xf32>
    %19 = arith.maximumf %17, %18 : vector<32x16xf32>
    %c0_11 = arith.constant 0 : index
    %c0_12 = arith.constant 0 : index
    %20 = vector.load %arg5[%c0_11, %c0_12] : memref<4x32xf32, #tpu.memory_space<vmem>>, vector<4x32xf32>
    %21 = arith.truncf %20 : vector<4x32xf32> to vector<4x32xbf16>
    %22 = arith.truncf %19 : vector<32x16xf32> to vector<32x16xbf16>
    %cst_13 = arith.constant dense<0.000000e+00> : vector<4x16xf32>
    %23 = tpu.matmul %21, %22, %cst_13 {dimension_numbers = #tpu.dot_dimension_numbers<[1], [0], [0], [1], [0, 0, 1, 1], [], []>} : vector<4x32xbf16>, vector<32x16xbf16>, vector<4x16xf32> -> vector<4x16xf32>
    %c0_14 = arith.constant 0 : index
    %c0_15 = arith.constant 0 : index
    %24 = vector.load %arg6[%c0_14, %c0_15] : memref<4x3xf32, #tpu.memory_space<vmem>>, vector<4x1xf32>
    %25 = vector.broadcast %24 : vector<4x1xf32> to vector<4x16xf32>
    %26 = arith.addf %23, %25 : vector<4x16xf32>
    %c0_16 = arith.constant 0 : index
    %c1_17 = arith.constant 1 : index
    %27 = vector.load %arg6[%c0_16, %c1_17] : memref<4x3xf32, #tpu.memory_space<vmem>>, vector<4x1xf32>
    %28 = vector.broadcast %27 : vector<4x1xf32> to vector<4x16xf32>
    %29 = arith.maximumf %26, %28 : vector<4x16xf32>
    %c0_18 = arith.constant 0 : index
    %c2 = arith.constant 2 : index
    %30 = vector.load %arg6[%c0_18, %c2] : memref<4x3xf32, #tpu.memory_space<vmem>>, vector<4x1xf32>
    %31 = vector.broadcast %30 : vector<4x1xf32> to vector<4x16xf32>
    %32 = arith.minimumf %29, %31 : vector<4x16xf32>
    %33 = tpu.transpose %32, [1, 0] : vector<4x16xf32> -> vector<16x4xf32>
    %c0_19 = arith.constant 0 : index
    %c0_20 = arith.constant 0 : index
    %34 = vector.load %arg7[%c0_19, %c0_20] : memref<16x4xf32, #tpu.memory_space<vmem>>, vector<16x4xf32>
    tpu.vector_store %arg7[%c0_19, %c0_20], %33 {strides = array<i32>} : memref<16x4xf32, #tpu.memory_space<vmem>>, vector<16x4xf32>,
    return
  }
  func.func @transform_0(%arg0: i32) -> (i32, i32) {
    %c0_i32 = arith.constant 0 : i32
    %c0_i32_0 = arith.constant 0 : i32
    return %arg0, %c0_i32 : i32, i32
  }
  func.func @transform_1(%arg0: i32) -> (i32, i32) {
    %c0_i32 = arith.constant 0 : i32
    %c0_i32_0 = arith.constant 0 : i32
    %c0_i32_1 = arith.constant 0 : i32
    return %c0_i32, %c0_i32_0 : i32, i32
  }
  func.func @transform_2(%arg0: i32) -> (i32, i32) {
    %c0_i32 = arith.constant 0 : i32
    %c0_i32_0 = arith.constant 0 : i32
    %c0_i32_1 = arith.constant 0 : i32
    return %c0_i32, %c0_i32_0 : i32, i32
  }
  func.func @transform_3(%arg0: i32) -> (i32, i32) {
    %c0_i32 = arith.constant 0 : i32
    %c0_i32_0 = arith.constant 0 : i32
    %c0_i32_1 = arith.constant 0 : i32
    return %c0_i32, %c0_i32_0 : i32, i32
  }
  func.func @transform_4(%arg0: i32) -> (i32, i32) {
    %c0_i32 = arith.constant 0 : i32
    %c0_i32_0 = arith.constant 0 : i32
    %c0_i32_1 = arith.constant 0 : i32
    return %c0_i32, %c0_i32_0 : i32, i32
  }
  func.func @transform_5(%arg0: i32) -> (i32, i32) {
    %c0_i32 = arith.constant 0 : i32
    %c0_i32_0 = arith.constant 0 : i32
    %c0_i32_1 = arith.constant 0 : i32
    return %c0_i32, %c0_i32_0 : i32, i32
  }
  func.func @transform_6(%arg0: i32) -> (i32, i32) {
    %c0_i32 = arith.constant 0 : i32
    %c0_i32_0 = arith.constant 0 : i32
    return %arg0, %c0_i32 : i32, i32
  }
}

</mosaic_0001>

<bundles_post_ra>
// kernel: limit_mlp.1
= control target key start
LH: loop header
LB: loop body
LE: loop exit
PB: predicated region body
PF: predicated region fallthrough
CT: control target
= control target key end

     0   :  { %v267_v4 = vmov 0   ;;  %vm89_vm0 = vcmask 130048   ;;  %v268_v17 = vmov 1   ;;  %vm143_vm1 = vcmask 261120   ;;  %s362_s0 = inlined_call_operand.vmem [shape: f32[16,16], index: 0, kind: input, shape index: {}]   ;;  %s363_s2 = inlined_call_operand.vmem [shape: f32[32,2], index: 2, kind: input, shape index: {}]   ;;  %s364_s1 = inlined_call_operand.vmem [shape: f32[32,16], index: 1, kind: input, shape index: {}]   ;;  %s365_s5 = inlined_call_operand.vmem [shape: f32[4,3], index: 5, kind: input, shape index: {}]   ;;  %s366_s3 = inlined_call_operand.vmem [shape: f32[32,32], index: 3, kind: input, shape index: {}]   ;;  %s367_s4 = inlined_call_operand.vmem [shape: f32[4,32], index: 4, kind: input, shape index: {}]   ;;  %s368_s6 = inlined_call_operand.vmem [shape: f32[16,4], index: 6, kind: output, shape index: {}]  }
   0x1   :  { %v24_v0 = vld [vmem:[%s362_s0] sm:$0xff]  ;;  %v25_v1 = vld [vmem:[%s362_s0 + $0x8] sm:$0xff]  ;;  %v67_v2 = vld [vmem:[%s363_s2 + $0x10] sm:$0xff]  ;;  %259 = vset.pattern.permute.xlu1 %v267_v4  ;;  %260 = vset.pattern.permute.xlu2 %v267_v4  ;;  %v269_v42 = vmov 2   ;;  %vm241_vm2 = vcmask 31744  }
   0x2   :  { %26 = vxpose.xlu0.b32.start [1/2] (short) (narrow) %v24_v0, 16  ;;  %v65_v3 = vld [vmem:[%s363_s2] sm:$0xff]  ;;  %81 = vperm.xlu1 %259, %v67_v2   ;;  %v68_v6 = vld [vmem:[%s363_s2 + $0x18] sm:$0xff]  ;;  %v66_v7 = vld [vmem:[%s363_s2 + $0x8] sm:$0xff] }
   0x3   :  { %71 = vperm.xlu2 %260, %v65_v3   ;;  %v59_v8 = vld [vmem:[%s364_s1] sm:$0xff]  ;;  %v60_v9 = vld [vmem:[%s364_s1 + $0x8] sm:$0xff]  ;;  %v61_v13 = vld [vmem:[%s364_s1 + $0x10] sm:$0xff] }
   0x4   :  { %v63_v12 = vpack.c.bf16 %v60_v9, %v59_v8  ;;  %v62_v14 = vld [vmem:[%s364_s1 + $0x18] sm:$0xff]  ;;  %v177_v22 = vld [vmem:[%s365_s5] sm:$0xf]  ;;  %v121_v34 = vld [vmem:[%s366_s3 + $0x10] sm:$0xff] }
   0x5   :  { %v64_v15 = vpack.c.bf16 %v62_v14, %v61_v13  ;;  %v122_v36 = vld [vmem:[%s366_s3 + $0x18] sm:$0xff]  ;;  %v119_v37 = vld [vmem:[%s366_s3] sm:$0xff]  ;;  %v120_v38 = vld [vmem:[%s366_s3 + $0x8] sm:$0xff] }
   0x6   :  { %v124_v40 = vpack.c.bf16 %v122_v36, %v121_v34  ;;  %v123_v41 = vpack.c.bf16 %v120_v38, %v119_v37  ;;  %v173_v60 = vld [vmem:[%s367_s4] sm:$0xf] }
   0x7   :  { %v174_v62 = vpack.c.bf16 %v173_v60, %v173_v60 }
   0xa   :  { %27 = vxpose.xlu0.b32.end [2/2] (short) (narrow) %v25_v1, 16  ;;  %86 = vperm.xlu1 %259, %v68_v6  }
   0xb   :  { %76 = vperm.xlu2 %260, %v66_v7  }
  0x12   :  { %262 = vset.pattern.permute.xlu1 %v268_v17 }
  0x13   :  { %140 = vperm.xlu1 %262, %v68_v6   ;;  %263 = vset.pattern.permute.xlu2 %v268_v17 }
  0x14   :  { %128 = vperm.xlu2 %263, %v65_v3  }
  0x1b   :  { %132 = vperm.xlu1 %262, %v66_v7  }
  0x1c   :  { %264 = vset.pattern.permute.xlu2 %v267_v4 }
  0x1d   :  { %180 = vperm.xlu2 %264, %v177_v22  }
  0x23   :  { %200 = vperm.xlu1 %262, %v177_v22  }
  0x25   :  { %265 = vset.pattern.permute.xlu2 %v269_v42 }
  0x26   :  { %205 = vperm.xlu2 %265, %v177_v22  }
  0x5d   :  { %v72_v19 = vpop.permute.xlu2 %71 }
  0x65   :  { %v77_v23 = vpop.permute.xlu2 %76 }
  0x6e   :  { %v129_v47 = vpop.permute.xlu2 %128 }
  0x71   :  { %261 = vset.pattern.permute.xlu0 %v268_v17 }
  0x74   :  { %v82_v20 = vpop.permute.xlu1 %81 }
  0x77   :  { %v181_v63 = vpop.permute.xlu2 %180 }
  0x78   :  { %136 = vperm.xlu0 %261, %v67_v2  }
  0x7c   :  { %v87_v25 = vpop.permute.xlu1 %86 }
  0x80   :  { %266 = vset.pattern.permute.xlu0 %v269_v42  ;;  %v206_v3 = vpop.permute.xlu2 %205 }
  0x85   :  { %v141_v44 = vpop.permute.xlu1 %140 }
  0x8d   :  { %v133_v50 = vpop.permute.xlu1 %132 }
  0x95   :  { %v201_v2 = vpop.permute.xlu1 %200 }
  0xa6   :  { %v42_v5 = vpop.trf.xlu0 }
  0xae   :  { %v43_v10 = vpop.trf.xlu0 }
  0xaf   :  { %v58_v11 = vpack.c.bf16 %v43_v10, %v42_v5 }
  0xb1   :  { %103 = vmatpush.bf16.msra.mxu0 %v58_v11 }
  0xb4   :  { %248 = vmatmul.msk.bf16.vlgmr.msra.gmra.mxu0 %vm89_vm0, %v63_v12 }
  0xc4   :  { %249 = vmatmul.msk.bf16.gmra.mxu0 %vm89_vm0, %v64_v15 }
  0xea   :  { %v137_v46 = vpop.permute.xlu0 %136 }
 0x131   :  { %v105_v16 = vpop.f32.mrf.mxu0 }
 0x132   :  { %v106_v29 = vadd.f32 %v105_v16, %v72_v19 }
 0x134   :  { %v115_v35 = vmax.f32 %v106_v29, 0.0 }
 0x139   :  { %v107_v18 = vpop.f32.mrf.mxu0 }
 0x13a   :  { %v108_v27 = vadd.f32 %v107_v18, %v77_v23 }
 0x13c   :  { %v116_v32 = vmax.f32 %v108_v27, 0.0 }
 0x13e   :  { %v125_v39 = vpack.c.bf16 %v116_v32, %v115_v35 }
 0x141   :  { %v110_v21 = vpop.f32.mrf.mxu0 }
 0x142   :  { %v111_v24 = vadd.f32 %v110_v21, %v82_v20 }
 0x144   :  { %v117_v30 = vmax.f32 %v111_v24, 0.0 }
 0x149   :  { %v112_v26 = vpop.f32.mrf.mxu0 }
 0x14a   :  { %v113_v28 = vadd.f32 %v112_v26, %v87_v25 }
 0x14c   :  { %v118_v31 = vmax.f32 %v113_v28, 0.0 }
 0x14e   :  { %v126_v33 = vpack.c.bf16 %v118_v31, %v117_v30 }
 0x150   :  { %156 = vmatpush.bf16.msra.mxu1 %v126_v33  ;;  %253 = vmatpush.bf16.msra.mxu3 %v126_v33 }
 0x154   :  { %157 = vmatpush.bf16.msra.mxu1 %v125_v39  ;;  %254 = vmatpush.bf16.msra.mxu3 %v125_v39 }
 0x157   :  { %251 = vmatmul.msk.bf16.vlgmr.msra.gmra.mxu3 %vm143_vm1, %v124_v40  ;;  %250 = vmatmul.msk.bf16.vlgmr.msra.gmra.mxu1 %vm143_vm1, %v123_v41 }
 0x1d4   :  { %v159_v43 = vpop.f32.mrf.mxu1 }
 0x1d5   :  { %v160_v52 = vadd.f32 %v159_v43, %v129_v47 }
 0x1d7   :  { %v169_v57 = vmax.f32 %v160_v52, 0.0 }
 0x1da   :  { %v164_v45 = vpop.f32.mrf.mxu3 }
 0x1db   :  { %v165_v49 = vadd.f32 %v164_v45, %v137_v46 }
 0x1dc   :  { %v161_v48 = vpop.f32.mrf.mxu1 }
 0x1dd   :  { %v162_v53 = vadd.f32 %v161_v48, %v133_v50  ;;  %v171_v55 = vmax.f32 %v165_v49, 0.0 }
 0x1df   :  { %v170_v58 = vmax.f32 %v162_v53, 0.0 }
 0x1e1   :  { %v175_v61 = vpack.c.bf16 %v170_v58, %v169_v57 }
 0x1e2   :  { %v166_v51 = vpop.f32.mrf.mxu3 }
 0x1e3   :  { %v167_v54 = vadd.f32 %v166_v51, %v141_v44 }
 0x1e5   :  { %v172_v56 = vmax.f32 %v167_v54, 0.0 }
 0x1e7   :  { %v176_v59 = vpack.c.bf16 %v172_v56, %v171_v55 }
 0x1e9   :  { %192 = vmatpush.bf16.msra.mxu2 %v176_v59 }
 0x1ed   :  { %193 = vmatpush.bf16.msra.mxu2 %v175_v61 }
 0x1f0   :  { %252 = vmatmul.msk.bf16.vlgmr.msra.gmra.mxu2 %vm143_vm1, %v174_v62 }
 0x273   :  { %v195_v0 = vpop.f32.mrf.mxu2 }
 0x274   :  { %v196_v1 = vadd.f32 %v195_v0, %v181_v63 }
 0x276   :  { %v203_v4 = vmax.f32 %v196_v1, %v201_v2 }
 0x278   :  { %v208_v5 = vmin.f32 %v203_v4, %v206_v3 }
 0x27a   :  { %209 = vxpose.xlu1.b32.start.end [1/1] (short) (narrow) %v208_v5, 16 }
 0x27b   :  { %v197_v6 = vpop.f32.mrf.mxu2 }
 0x31e   :  { %v225_v7 = vpop.trf.xlu1 }
 0x31f   :  { %242 = vst.msk [vmem:[%s368_s6] sm:$0xff] %vm241_vm2, %v225_v7 }
 0x326   :  { %v226_v8 = vpop.trf.xlu1 }
 0x327   :  { %243 = vst.msk [vmem:[%s368_s6 + $0x8] sm:$0xff] %vm241_vm2, %v226_v8 }

</bundles_post_ra>
